<compile_context>
chip_gen: v6e
topology: v6e:2x2x1
jax: 0.10.0
libtpu: 0.0.40
codegen_flags: <defaults>
</compile_context>

<pallas_src>
import jax
import jax.numpy as jnp
from jax.experimental import pallas as pl
from jax.experimental.pallas import tpu as pltpu


def bell_mf_kernel(x_ref, e_ref, p_ref, o_ref):
    # x_ref: (TB, F)   raw inputs (f32), streamed per batch tile
    # e_ref: (F, FM)   0/1 selection matrix, E[f, f*M + m] = 1  (resident)
    # p_ref: (4, FM)   packed params: rows = (1/a, b/2, c/a, spare) (resident)
    # o_ref: (TB, FM)  flattened (F, M) output tile, lane-dense
    x = x_ref[...]
    e = e_ref[...]

    # Lane expansion on the idle MXU; exact bf16 hi/lo split keeps it
    # f32-accurate regardless of the MXU's default f32 emulation depth.
    x_hi = x.astype(jnp.bfloat16).astype(jnp.float32)
    x_lo = x - x_hi
    x_exp = (jnp.dot(x_hi, e, preferred_element_type=jnp.float32)
             + jnp.dot(x_lo, e, preferred_element_type=jnp.float32))

    p = p_ref[...]
    inv_a = p[0:1, :]        # 1 / a
    b_half = p[1:2, :]       # b / 2
    c_s = p[2:3, :]          # c / a

    t = x_exp * inv_a - c_s                     # (x - c) / a
    t2 = t * t                                  # |t|^2   (drops the abs)
    # |t|^(2b) = exp(b*log(t2));  1/(1+exp(u)) = 0.5 - 0.5*tanh(u/2)
    #   -> 2 EUP pushes per element (log, tanh) instead of 3.
    # t2 == 0: torch gives 1 for b > 0; the where masks the 0*(-inf) NaN from
    # the unselected branch -- do not remove the guard.
    u = b_half * jnp.log(t2)
    out = jnp.where(t2 > 0.0, 0.5 - 0.5 * jnp.tanh(u), 1.0)
    o_ref[...] = out.astype(o_ref.dtype)


def _vmem_budget():
    """Chip-aware (per-buffer bytes, scoped vmem limit)."""
    per_buffer, limit = 4 << 20, 32 << 20          # conservative: v7x (64 MiB VMEM)
    try:
        cap = getattr(pltpu.get_tpu_info(), "vmem_capacity_bytes", 0) or 0
        if cap >= (96 << 20):                      # v5e / v6e: 128 MiB VMEM
            per_buffer, limit = 8 << 20, 64 << 20
    except Exception:
        pass
    return per_buffer, limit


def _choose_batch_tile(B, F, FM, out_itemsize, per_buffer_bytes):
    """Largest batch tile keeping each streamed buffer under the budget.
    Multiple of 16 for 2-byte outputs (bf16 sublane packing), else 8."""
    sub = 16 if out_itemsize < 4 else 8
    cap = min(per_buffer_bytes // max(FM * out_itemsize, 1),
              per_buffer_bytes // max(F * 4, 1))
    tb = max(sub, (cap // sub) * sub)
    b_up = ((B + sub - 1) // sub) * sub            # no need to exceed padded B
    return min(tb, b_up)


def bell_mf(x, a, b, c, *, out_dtype=None):
    """out[i, f, m] = 1 / (1 + |(x[i, f] - c[f, m]) / a[f, m]| ** (2 b[f, m]))

    out_dtype=jnp.bfloat16 halves the dominant HBM store stream (values are in
    (0, 1]); default keeps x.dtype for exact module semantics.
    """
    B, F = x.shape
    F2, M = a.shape
    assert F == F2 and b.shape == (F, M) and c.shape == (F, M)
    FM = F * M
    out_dtype = jnp.dtype(x.dtype if out_dtype is None else out_dtype)

    x32 = x.astype(jnp.float32)
    a32 = a.astype(jnp.float32)
    b32 = b.astype(jnp.float32)
    c32 = c.astype(jnp.float32)

    # Packed resident params: rows = (1/a, b/2, c/a, spare).  Hoists the
    # per-element divide and the 0.5 factor of the tanh identity.
    inv_a = 1.0 / a32
    params = jnp.stack(
        [inv_a, 0.5 * b32, c32 * inv_a, jnp.zeros_like(a32)], axis=0
    ).reshape(4, FM)

    # 0/1 selection matrix for the in-kernel lane expansion: E[f, f*M+m] = 1.
    f_idx = jnp.arange(F, dtype=jnp.int32)[:, None]
    col = jnp.arange(FM, dtype=jnp.int32)[None, :]
    expand = ((col >= f_idx * M) & (col < (f_idx + 1) * M)).astype(jnp.float32)

    per_buffer_bytes, vmem_limit = _vmem_budget()
    tb = _choose_batch_tile(B, F, FM, out_dtype.itemsize, per_buffer_bytes)

    # Pad B up to a multiple of the tile (no giant un-pipelined fallback).
    B_pad = ((B + tb - 1) // tb) * tb
    if B_pad != B:
        x32 = jnp.concatenate(
            [x32, jnp.zeros((B_pad - B, F), jnp.float32)], axis=0)

    grid = (B_pad // tb,)
    out_flat = pl.pallas_call(
        bell_mf_kernel,
        out_shape=jax.ShapeDtypeStruct((B_pad, FM), out_dtype),
        grid=grid,
        in_specs=[
            pl.BlockSpec((tb, F), lambda i: (i, 0)),     # x streamed per tile
            pl.BlockSpec((F, FM), lambda i: (0, 0)),     # expansion matrix, resident
            pl.BlockSpec((4, FM), lambda i: (0, 0)),     # packed params, resident
        ],
        out_specs=pl.BlockSpec((tb, FM), lambda i: (i, 0)),
        compiler_params=pltpu.CompilerParams(
            # On v7x, confirm in the profile that this shards across both
            # TensorCores; if not, switch to pltpu.CORE_PARALLEL.
            dimension_semantics=("parallel",),
            vmem_limit_bytes=vmem_limit,
        ),
    )(x32, expand, params)

    if B_pad != B:
        out_flat = out_flat[:B]
    # Trailing-dim split back to the module's (B, F, M) convention (free).
    return out_flat.reshape(B, F, M)


def bell_mf_reference(x, a, b, c):
    xe = x[:, :, None]
    return 1.0 / (1.0 + jnp.abs((xe - c[None]) / a[None]) ** (2.0 * b[None]))


if __name__ == "__main__":
    # Small shapes consistent with the module: batch=8, in_features=16, mf_per_input=4
    batch, in_features, mf_per_input = 8, 16, 4

    key = jax.random.PRNGKey(0)
    x = jax.random.uniform(key, (batch, in_features), dtype=jnp.float32)

    # Deterministic parameter init mirroring the module's __init__:
    #   a = ones(F, M), b = ones(F, M), c = linspace(0, 1, M) repeated per feature
    a = jnp.ones((in_features, mf_per_input), dtype=jnp.float32)
    b = jnp.ones((in_features, mf_per_input), dtype=jnp.float32)
    c = jnp.tile(jnp.linspace(0.0, 1.0, mf_per_input, dtype=jnp.float32),
                 (in_features, 1))

    out = bell_mf(x, a, b, c)
    out = jax.block_until_ready(out)

    ref = bell_mf_reference(x, a, b, c)
    assert out.shape == (batch, in_features, mf_per_input)
    # Tight tolerance: no approx reciprocal anymore; worst-case error is the
    # hi/lo-split MXU expansion (<~1e-5) plus f32 log/tanh rounding (~1e-7).
    assert jnp.allclose(out, ref, rtol=2e-5, atol=2e-5), "mismatch vs reference"

    print("KERNEL_OK")
</pallas_src>

<mosaic_0001>
module attributes {stable_mosaic.version = 11 : i64} {
  func.func @bell_mf_kernel(%arg0: i32, %arg1: memref<8x16xf32, #tpu.memory_space<vmem>>, %arg2: memref<16x64xf32, #tpu.memory_space<vmem>>, %arg3: memref<4x64xf32, #tpu.memory_space<vmem>>, %arg4: memref<8x64xf32, #tpu.memory_space<vmem>>) attributes {dimension_semantics = [#tpu.dimension_semantics<parallel>], iteration_bounds = array<i64: 1>, scalar_prefetch = 0 : i64, scratch_operands = 0 : i64, tpu.core_type = #tpu.core_type<tc>, window_params = [{transform_indices = @transform_0, window_bounds = array<i64: 8, 16>}, {pipeline_mode = #tpu.pipeline_mode<synchronous>, transform_indices = @transform_1, window_bounds = array<i64: 16, 64>}, {pipeline_mode = #tpu.pipeline_mode<synchronous>, transform_indices = @transform_2, window_bounds = array<i64: 4, 64>}, {transform_indices = @transform_3, window_bounds = array<i64: 8, 64>}]} {
    %c0 = arith.constant 0 : index
    %c0_0 = arith.constant 0 : index
    %0 = vector.load %arg1[%c0, %c0_0] : memref<8x16xf32, #tpu.memory_space<vmem>>, vector<8x16xf32>
    %c0_1 = arith.constant 0 : index
    %c0_2 = arith.constant 0 : index
    %1 = vector.load %arg2[%c0_1, %c0_2] : memref<16x64xf32, #tpu.memory_space<vmem>>, vector<16x64xf32>
    %2 = arith.truncf %0 : vector<8x16xf32> to vector<8x16xbf16>
    %3 = arith.extf %2 : vector<8x16xbf16> to vector<8x16xf32>
    %4 = arith.subf %0, %3 : vector<8x16xf32>
    %cst = arith.constant dense<0.000000e+00> : vector<8x64xf32>
    %5 = tpu.matmul %3, %1, %cst {dimension_numbers = #tpu.dot_dimension_numbers<[1], [0], [0], [1], [0, 0, 1, 1], [], []>} : vector<8x16xf32>, vector<16x64xf32>, vector<8x64xf32> -> vector<8x64xf32>
    %cst_3 = arith.constant dense<0.000000e+00> : vector<8x64xf32>
    %6 = tpu.matmul %4, %1, %cst_3 {dimension_numbers = #tpu.dot_dimension_numbers<[1], [0], [0], [1], [0, 0, 1, 1], [], []>} : vector<8x16xf32>, vector<16x64xf32>, vector<8x64xf32> -> vector<8x64xf32>
    %7 = arith.addf %5, %6 : vector<8x64xf32>
    %c0_4 = arith.constant 0 : index
    %c0_5 = arith.constant 0 : index
    %8 = vector.load %arg3[%c0_4, %c0_5] : memref<4x64xf32, #tpu.memory_space<vmem>>, vector<4x64xf32>
    %9 = vector.extract_strided_slice %8 {offsets = [0, 0], sizes = [1, 64], strides = [1, 1]} : vector<4x64xf32> to vector<1x64xf32>
    %10 = vector.extract_strided_slice %8 {offsets = [1, 0], sizes = [1, 64], strides = [1, 1]} : vector<4x64xf32> to vector<1x64xf32>
    %11 = vector.extract_strided_slice %8 {offsets = [2, 0], sizes = [1, 64], strides = [1, 1]} : vector<4x64xf32> to vector<1x64xf32>
    %12 = vector.broadcast %9 : vector<1x64xf32> to vector<8x64xf32>
    %13 = arith.mulf %7, %12 : vector<8x64xf32>
    %14 = vector.broadcast %11 : vector<1x64xf32> to vector<8x64xf32>
    %15 = arith.subf %13, %14 : vector<8x64xf32>
    %16 = arith.mulf %15, %15 : vector<8x64xf32>
    %17 = math.log %16 : vector<8x64xf32>
    %18 = vector.broadcast %10 : vector<1x64xf32> to vector<8x64xf32>
    %19 = arith.mulf %18, %17 : vector<8x64xf32>
    %cst_6 = arith.constant 0.000000e+00 : f32
    %20 = vector.broadcast %cst_6 : f32 to vector<8x64xf32>
    %21 = arith.cmpf ogt, %16, %20 : vector<8x64xf32>
    %22 = math.tanh %19 : vector<8x64xf32>
    %cst_7 = arith.constant 5.000000e-01 : f32
    %23 = vector.broadcast %cst_7 : f32 to vector<8x64xf32>
    %24 = arith.mulf %23, %22 : vector<8x64xf32>
    %cst_8 = arith.constant 5.000000e-01 : f32
    %25 = vector.broadcast %cst_8 : f32 to vector<8x64xf32>
    %26 = arith.subf %25, %24 : vector<8x64xf32>
    %cst_9 = arith.constant 1.000000e+00 : f32
    %27 = vector.broadcast %cst_9 : f32 to vector<8x64xf32>
    %28 = arith.select %21, %26, %27 : vector<8x64xi1>, vector<8x64xf32>
    %c0_10 = arith.constant 0 : index
    %c0_11 = arith.constant 0 : index
    %29 = vector.load %arg4[%c0_10, %c0_11] : memref<8x64xf32, #tpu.memory_space<vmem>>, vector<8x64xf32>
    tpu.vector_store %arg4[%c0_10, %c0_11], %28 {strides = array<i32>} : memref<8x64xf32, #tpu.memory_space<vmem>>, vector<8x64xf32>,
    return
  }
  func.func @transform_0(%arg0: i32) -> (i32, i32) {
    %c0_i32 = arith.constant 0 : i32
    %c0_i32_0 = arith.constant 0 : i32
    return %arg0, %c0_i32 : i32, i32
  }
  func.func @transform_1(%arg0: i32) -> (i32, i32) {
    %c0_i32 = arith.constant 0 : i32
    %c0_i32_0 = arith.constant 0 : i32
    %c0_i32_1 = arith.constant 0 : i32
    return %c0_i32, %c0_i32_0 : i32, i32
  }
  func.func @transform_2(%arg0: i32) -> (i32, i32) {
    %c0_i32 = arith.constant 0 : i32
    %c0_i32_0 = arith.constant 0 : i32
    %c0_i32_1 = arith.constant 0 : i32
    return %c0_i32, %c0_i32_0 : i32, i32
  }
  func.func @transform_3(%arg0: i32) -> (i32, i32) {
    %c0_i32 = arith.constant 0 : i32
    %c0_i32_0 = arith.constant 0 : i32
    return %arg0, %c0_i32 : i32, i32
  }
}

</mosaic_0001>

<bundles_post_ra>
// kernel: tpu_custom_call.1
= control target key start
LH: loop header
LB: loop body
LE: loop exit
PB: predicated region body
PF: predicated region fallthrough
CT: control target
= control target key end

     0   :  { %8 = vsyncpa [#allocation3], 0  ;;  %s407_s0 = inlined_call_operand.hbm [shape: f32[8,16], index: 0, kind: input, shape index: {}]   ;;  %s408_s1 = inlined_call_operand.hbm [shape: f32[16,64], index: 1, kind: input, shape index: {}]   ;;  %s409_s2 = inlined_call_operand.hbm [shape: f32[4,64], index: 2, kind: input, shape index: {}]   ;;  %s410_s3 = inlined_call_operand.hbm [shape: f32[8,64], index: 3, kind: output, shape index: {}]  }
   0x1   :  { %9 = vsyncpa [#allocation6], 0 }
   0x2   :  { %10 = vsyncpa [#allocation4], 0  ;;  %s367_s12 = smov [#allocation5]  }
   0x3   :  { %s26_s13 = sshll.u32 %s367_s12, 4  ;;  %s27_s13 = int_to_ptr.vmem [resolvable:$true] %s26_s13 }
   0x4   :  { %s289_s14 = scalar_lea.vmem %s27_s13, 256  ;;  %p294_p1 = scmp.lt.s32.totalorder %s27_s13, %s27_s13 }
   0x5   :  { %p290_p0 = scmp.ne.s32.totalorder %s27_s13, %s289_s14  ;;  %p295_p2 = scmp.lt.s32.totalorder %s289_s14, %s289_s14 }
   0x7   :  { %p296_p3 = por %p295_p2, %p294_p1 }
   0x9   :  { %p297_p4 = pnand %p296_p3, %p290_p0 }
   0xb   :  { %300 = shalt.err (!%p297_p4)
}
   0xc   :  { %s368_s15 = smov 128   ;;  %s369_s16 = smov 8  }
   0xd   :  { %32 = dma.hbm_to_vmem [thread:$0]  %s408_s1, 256, %s27_s13, [#allocation6], %s368_s15, %s368_s15, %s369_s16  }
   0xe   :  { %s370_s19 = smov [#allocation2]   ;;  %s371_s21 = smov [#allocation7]  }
   0xf   :  { %s17_s20 = sshll.u32 %s370_s19, 4  ;;  %s39_s22 = sshll.u32 %s371_s21, 4  ;;  %s18_s20 = int_to_ptr.vmem [resolvable:$true] %s17_s20  ;;  %s40_s22 = int_to_ptr.vmem [resolvable:$true] %s39_s22 }
  0x10   :  { %s309_s23 = scalar_lea.vmem %s18_s20, 128  ;;  %p314_p6 = scmp.lt.s32.totalorder %s18_s20, %s18_s20 }
  0x11   :  { %p310_p5 = scmp.ne.s32.totalorder %s18_s20, %s309_s23  ;;  %p315_p7 = scmp.lt.s32.totalorder %s309_s23, %s309_s23 }
  0x13   :  { %p316_p8 = por %p315_p7, %p314_p6 }
  0x15   :  { %p317_p9 = pnand %p316_p8, %p310_p5 }
  0x17   :  { %320 = shalt.err (!%p317_p9)
}
  0x18   :  { %20 = dma.hbm_to_vmem [thread:$0]  %s407_s0, 128, %s18_s20, [#allocation3]  }
  0x19   :  { %s329_s26 = scalar_lea.vmem %s40_s22, 64  ;;  %p334_p11 = scmp.lt.s32.totalorder %s40_s22, %s40_s22 }
  0x1a   :  { %p330_p10 = scmp.ne.s32.totalorder %s40_s22, %s329_s26  ;;  %p335_p12 = scmp.lt.s32.totalorder %s329_s26, %s329_s26 }
  0x1c   :  { %p336_p13 = por %p335_p12, %p334_p11 }
  0x1e   :  { %p337_p0 = pnand %p336_p13, %p330_p10 }
  0x20   :  { %340 = shalt.err (!%p337_p0)
}
  0x21   :  { %42 = dma.hbm_to_vmem [thread:$0]  %s409_s2, 64, %s40_s22, [#allocation6]  }
  0x22   :  { %361 = dma.done.wait [#allocation3], 128  }
  0x23   :  { %362 = vsyncadd [#allocation3], 4294967168 }
  0x24   :  { %363 = dma.done.wait [#allocation6], 320  }
  0x25   :  { %364 = vsyncadd [#allocation6], 4294966976  ;;  %v372_v0 = vmov 0.0   ;;  %vm373_vm0 = vmmov 0   ;;  %v54_v1 = vld [vmem:[#allocation5 + $0x8] sm:$0xff]  ;;  %v53_v2 = vld [vmem:[#allocation5] sm:$0xff]  ;;  %v206_v7 = vlaneseq }
  0x26   :  { %262 = vmatprep.subr.mxu1 %v372_v0  ;;  %255 = vmatprep.subr.mxu0 %v372_v0  ;;  %v52_v3 = vld [vmem:[#allocation2] sm:$0xff]  ;;  %vm58_vm1 = vcmask 130048   ;;  %v205_v10 = vld [vmem:[#allocation7] sm:$0xf]  ;;  %s374_s0 = smov [#allocation8]   ;;  %vm229_vm2 = vcmask 523264  }
  0x27   :  { %266 = vmatprep.mubr.msk.f32.mxu1 %vm373_vm0, %v372_v0  ;;  %259 = vmatprep.mubr.msk.f32.mxu0 %vm373_vm0, %v372_v0  ;;  %v55_v4 = vpack.c.bf16 %v52_v3, %v52_v3  ;;  %v207_v8 = vshrl.u32 %v206_v7, 7  ;;  %s237_s2 = sshll.u32 %s374_s0, 4  ;;  %s238_s2 = int_to_ptr.vmem [resolvable:$true] %s237_s2 }
  0x28   :  { %263 = vmatpush3.msra.mxu1 %v54_v1  ;;  %256 = vmatpush3.msra.mxu0 %v54_v1  ;;  %s341_s28 = scalar_lea.vmem %s238_s2, 128  ;;  %p346_p2 = scmp.lt.s32.totalorder %s238_s2, %s238_s2 }
  0x29   :  { %264 = vmatprep.subr.mxu1 %v372_v0  ;;  %257 = vmatprep.subr.mxu0 %v372_v0  ;;  %v56_v5 = vunpack.c.l.bf16 %v55_v4  ;;  %v208_v9 = vsub.s32 0, %v207_v8  ;;  %v213_v11 = vsub.s32 2, %v207_v8  ;;  %v221_v22 = vsub.s32 1, %v207_v8  ;;  %p342_p1 = scmp.ne.s32.totalorder %s238_s2, %s341_s28  ;;  %p347_p3 = scmp.lt.s32.totalorder %s341_s28, %s341_s28 }
  0x2a   :  { %265 = vmatpush3.msra.mxu1 %v53_v2  ;;  %258 = vmatpush3.msra.mxu0 %v53_v2 }
  0x2b   :  { %267 = vmatmul.mubr.msk.f32.vlgmr.msra.gmra.mxu1 %vm58_vm1, %v56_v5  ;;  %v57_v6 = vsub.f32 %v52_v3, %v56_v5  ;;  %v209_v13 = vrot.slane %v205_v10, %v208_v9  ;;  %v214_v17 = vrot.slane %v205_v10, %v213_v11  ;;  %v222_v23 = vrot.slane %v205_v10, %v221_v22  ;;  %p348_p4 = por %p347_p3, %p346_p2 }
  0x2d   :  { %260 = vmatmul.mubr.msk.f32.vlgmr.msra.gmra.mxu0 %vm58_vm1, %v57_v6  ;;  %p349_p5 = pnand %p348_p4, %p342_p1 }
  0xeb   :  { %v201_v12 = vpop.f32.mrf.mxu1 }
  0xed   :  { %v128_v14 = vpop.f32.mrf.mxu0  ;;  %v268_v15 = vpop.f32.mrf.mxu1 }
  0xee   :  { %v202_v16 = vadd.f32 %v201_v12, %v128_v14 }
  0xef   :  { %v261_v18 = vpop.f32.mrf.mxu0 }
  0xf0   :  { %v210_v19 = vmul.f32 %v209_v13, %v202_v16 }
  0xf2   :  { %v215_v20 = vsub.f32 %v210_v19, %v214_v17 }
  0xf4   :  { %v216_v21 = vmul.f32 %v215_v20, %v215_v20 }
  0xf6   :  { %277 = vlog2.f32 %v216_v21  ;;  %vm224_vm3 = vcmp.gt.f32.partialorder %v216_v21, 0.0 }
 0x103   :  { %v278_v24 = vpop.eup %277 }
 0x104   :  { %v218_v25 = vmul.f32 0.6931472, %v278_v24 }
 0x106   :  { %v223_v26 = vmul.f32 %v222_v23, %v218_v25 }
 0x108   :  { %279 = vtanh.f32 %v223_v26 }
 0x115   :  { %v280_v27 = vpop.eup %279 }
 0x116   :  { %v226_v28 = vmul.f32 0.5, %v280_v27 }
 0x118   :  { %v227_v29 = vsub.f32 0.5, %v226_v28 }
 0x11a   :  { %v228_v30 = vsel %vm224_vm3, %v227_v29, 1.0 }
 0x11b   :  { %230 = vst.msk [vmem:[#allocation8] sm:$0xff] %vm229_vm2, %v228_v30 }
 0x11c   :  { %352 = shalt.err (!%p349_p5)
}
 0x11d   :  { %240 = dma.vmem_to_hbm [thread:$0]  %s238_s2, 128, %s410_s3, [#allocation4]  }
 0x11e   :  { %365 = dma.done.wait [#allocation4], 128  }
 0x11f   :  { %366 = vsyncadd [#allocation4], 4294967168 }
 0x120   :  { %244 = vsyncpa [#allocation3], 1 }
 0x121   :  { %245 = vsyncpa [#allocation6], 1 }
 0x122   :  { %246 = vsyncpa [#allocation4], 1 }

</bundles_post_ra>
